<compile_context>
chip_gen: v6e
topology: v6e:2x2x1
jax: 0.10.0
libtpu: 0.0.40
codegen_flags: <defaults>
</compile_context>

<pallas_src>
import functools
import math

import jax
import jax.numpy as jnp
from jax.experimental import pallas as pl
from jax.experimental.pallas import tpu as pltpu


_SMALL_INPUT_BYTES = 1 << 20  # below this, fused XLA multiply beats the pallas launch


def _round_up(v, m):
    return ((v + m - 1) // m) * m


@functools.lru_cache(maxsize=None)
def _chip_defaults():
    """(target block bytes for x, vmem_limit_bytes or None), per TPU generation.

    v7x : ~3.2 TB/s HBM, 64 MiB physical VMEM -> 6 MiB blocks, raise scoped
          VMEM to 48 MiB (in+out double-buffered ~ 24 MiB + headroom).
    v6e : ~1.4 TB/s, 32 MiB scoped default    -> 4 MiB blocks (16 MiB pipelined).
    v5e / other / unknown: 16 MiB scoped      -> 2 MiB blocks (8 MiB pipelined).
    """
    try:
        kind = jax.devices()[0].device_kind.lower()
    except Exception:  # pragma: no cover - defensive
        kind = ""
    if "v7" in kind or "7x" in kind or "tpu7" in kind:
        return 6 * 1024 * 1024, 48 << 20
    if "v6" in kind:
        return 4 * 1024 * 1024, None
    return 2 * 1024 * 1024, None


def _pick_lane_width(feat):
    """Largest lane-aligned width dividing the per-sample feature count, so a
    row never straddles two samples; None if feat is not 128-divisible."""
    for lane in (2048, 1024, 512, 256, 128):
        if feat % lane == 0:
            return lane
    return None


def _is_16bit_float(dtype):
    d = jnp.dtype(dtype)
    return jnp.issubdtype(d, jnp.floating) and d.itemsize == 2


def _drop_path_kernel(x_ref, scale_ref, o_ref):
    # scale is 0 or 1/keep_prob per row; single broadcast multiply on the VPU.
    o_ref[...] = (x_ref[...] * scale_ref[...]).astype(o_ref.dtype)


def drop_path_pallas(x, drop_prob: float, training: bool, key, *,
                     force_pallas: bool = False, block_bytes: int | None = None):
    """Pallas TPU implementation of drop_path(x, drop_prob, training)."""
    if drop_prob == 0.0 or not training:
        return x

    keep_prob = 1.0 - float(drop_prob)
    if keep_prob <= 0.0:
        # PyTorch's unguarded x.div(0) would give NaN; semantically every path
        # is dropped, so return zeros.
        return jnp.zeros_like(x)

    n = x.shape[0]
    feat = math.prod(x.shape[1:])
    itemsize = jnp.dtype(x.dtype).itemsize

    # Per-sample mask/scale computed once in f32: exactly 0.0 or 1/keep_prob.
    rand = jax.random.uniform(key, (n, 1), dtype=jnp.float32)
    scale = jnp.floor(keep_prob + rand) * (1.0 / keep_prob)          # (n, 1) f32
    if _is_16bit_float(x.dtype):
        # Keep the block multiply on the native 16-bit VALU (v6e/v7x) and halve
        # the vreg footprint; values are exact 0 or a single rounded constant.
        scale = scale.astype(x.dtype)

    # ---- Small-input fast path ---------------------------------------------
    if not force_pallas and n * feat * itemsize < _SMALL_INPUT_BYTES:
        bshape = (n,) + (1,) * (x.ndim - 1)
        return (x * scale.reshape(bshape)).astype(x.dtype)

    # ---- Re-layout (views only: no padding, no extra HBM passes) -----------
    lane = _pick_lane_width(feat)
    if lane is not None:
        width = lane
        rows_per_sample = feat // lane
    else:
        # Ragged feature count: keep the full per-sample feature vector as the
        # last dim (block last dim == full array dim is legal); stores of the
        # ragged lane tail are masked by the hardware, no padding needed.
        width = feat
        rows_per_sample = 1
    rows = n * rows_per_sample
    xs = x.reshape(rows, width)

    row_scale = scale if rows_per_sample == 1 else jnp.repeat(scale, rows_per_sample, axis=0)

    # ---- Row-block sizing ----------------------------------------------------
    sub = {4: 8, 2: 16, 1: 32}.get(itemsize, 8)      # native sublane tiling
    target_bytes, vmem_limit = _chip_defaults()
    if block_bytes is not None:
        target_bytes = block_bytes

    rb_target = max(sub, (target_bytes // (width * itemsize) // sub) * sub)
    if rb_target >= rows:
        rb = rows                       # single full-extent block (legal even if rows % sub != 0)
    else:
        # Balance block sizes across steps so the masked tail block is not
        # nearly empty (avoids one almost-useless grid step).
        nsteps = -(-rows // rb_target)
        rb = _round_up(-(-rows // nsteps), sub)
        if rb >= rows:
            rb = rows

    grid = (pl.cdiv(rows, rb),)

    out = pl.pallas_call(
        _drop_path_kernel,
        out_shape=jax.ShapeDtypeStruct((rows, width), x.dtype),
        grid_spec=pltpu.PrefetchScalarGridSpec(
            num_scalar_prefetch=0,
            grid=grid,
            in_specs=[
                pl.BlockSpec((rb, width), lambda i: (i, 0)),
                pl.BlockSpec((rb, 1), lambda i: (i, 0)),
            ],
            out_specs=pl.BlockSpec((rb, width), lambda i: (i, 0)),
        ),
        compiler_params=pltpu.CompilerParams(
            # TODO(synk): verify in xprof that both v7x TensorCores pick up grid
            # steps with "parallel"; switch to pltpu.CORE_PARALLEL if one idles.
            dimension_semantics=("parallel",),
            vmem_limit_bytes=vmem_limit,
        ),
    )(xs, row_scale)

    return out.reshape(x.shape)


class DropPath:
    """JAX/Pallas analogue of the PyTorch DropPath module."""

    def __init__(self, drop_prob=None):
        self.drop_prob = drop_prob if drop_prob is not None else 0.0
        self.training = True

    def __call__(self, x, key, force_pallas: bool = False):
        # TODO(synk): PyTorch draws torch.rand in x.dtype from its own RNG
        # stream; here the draw is a jax.random f32 uniform (statistically
        # equivalent, not bitwise-matched).
        return drop_path_pallas(x, self.drop_prob, self.training, key,
                                force_pallas=force_pallas)


if __name__ == "__main__":
    root = jax.random.PRNGKey(0)
    k_x, k_x2, k_x3, k_drop = jax.random.split(root, 4)

    def ref_drop_path(x, drop_prob, key):
        keep_prob = 1.0 - drop_prob
        rand = jax.random.uniform(key, (x.shape[0], 1), dtype=jnp.float32)
        s = jnp.floor(keep_prob + rand) * (1.0 / keep_prob)
        if _is_16bit_float(x.dtype):
            s = s.astype(x.dtype)
        s = s.reshape((x.shape[0],) + (1,) * (x.ndim - 1))
        return (x * s).astype(x.dtype)

    module = DropPath(drop_prob=0.25)
    module.training = True

    # 1) Demo shape (lane-divisible features), forced through the kernel.
    x = jax.random.normal(k_x, (2, 4, 16, 16), dtype=jnp.float32)
    out = jax.block_until_ready(module(x, k_drop, force_pallas=True))
    assert out.shape == x.shape and out.dtype == x.dtype
    assert jnp.allclose(out, ref_drop_path(x, 0.25, k_drop), rtol=1e-6, atol=1e-6)

    # 2) Ragged feature count (feat % 128 != 0) -> full-extent last-dim path.
    x2 = jax.random.normal(k_x2, (4, 3, 10, 10), dtype=jnp.float32)
    out2 = jax.block_until_ready(module(x2, k_drop, force_pallas=True))
    assert jnp.allclose(out2, ref_drop_path(x2, 0.25, k_drop), rtol=1e-6, atol=1e-6)

    # 3) Row count not a multiple of the block -> masked partial tail block.
    x3 = jax.random.normal(k_x3, (10, 4, 16, 16), dtype=jnp.float32)
    out3 = jax.block_until_ready(
        drop_path_pallas(x3, 0.25, True, k_drop, force_pallas=True,
                         block_bytes=32 * 1024))
    assert jnp.allclose(out3, ref_drop_path(x3, 0.25, k_drop), rtol=1e-6, atol=1e-6)

    # 4) bf16 path (scale cast to bf16, native 16-bit multiply).
    xb = jax.random.normal(k_x, (2, 4, 16, 16), dtype=jnp.float32).astype(jnp.bfloat16)
    outb = jax.block_until_ready(module(xb, k_drop, force_pallas=True))
    refb = ref_drop_path(xb, 0.25, k_drop)
    assert outb.dtype == jnp.bfloat16
    assert jnp.allclose(outb.astype(jnp.float32), refb.astype(jnp.float32),
                        rtol=2e-2, atol=2e-2)

    # 5) Small-input fast path (no force) matches as well.
    out_fast = jax.block_until_ready(module(x, k_drop))
    assert jnp.allclose(out_fast, ref_drop_path(x, 0.25, k_drop), rtol=1e-6, atol=1e-6)

    # 6) Eval / drop_prob == 0 are identity; drop_prob == 1 drops everything.
    module.training = False
    assert jnp.array_equal(jax.block_until_ready(module(x, k_drop)), x)
    module.training = True
    assert jnp.array_equal(jax.block_until_ready(DropPath(0.0)(x, k_drop)), x)
    assert jnp.array_equal(
        jax.block_until_ready(drop_path_pallas(x, 1.0, True, k_drop)),
        jnp.zeros_like(x))

    print("KERNEL_OK")
</pallas_src>

<mosaic_0001>
module attributes {stable_mosaic.version = 11 : i64} {
  func.func @_drop_path_kernel(%arg0: i32, %arg1: memref<2x1024xf32, #tpu.memory_space<vmem>>, %arg2: memref<2x1xf32, #tpu.memory_space<vmem>>, %arg3: memref<2x1024xf32, #tpu.memory_space<vmem>>) attributes {dimension_semantics = [#tpu.dimension_semantics<parallel>], iteration_bounds = array<i64: 1>, scalar_prefetch = 0 : i64, scratch_operands = 0 : i64, tpu.core_type = #tpu.core_type<tc>, window_params = [{transform_indices = @transform_0, window_bounds = array<i64: 2, 1024>}, {transform_indices = @transform_1, window_bounds = array<i64: 2, 1>}, {transform_indices = @transform_2, window_bounds = array<i64: 2, 1024>}]} {
    %c0 = arith.constant 0 : index
    %c0_0 = arith.constant 0 : index
    %0 = vector.load %arg1[%c0, %c0_0] : memref<2x1024xf32, #tpu.memory_space<vmem>>, vector<2x1024xf32>
    %c0_1 = arith.constant 0 : index
    %c0_2 = arith.constant 0 : index
    %1 = vector.load %arg2[%c0_1, %c0_2] : memref<2x1xf32, #tpu.memory_space<vmem>>, vector<2x1xf32>
    %2 = vector.broadcast %1 : vector<2x1xf32> to vector<2x1024xf32>
    %3 = arith.mulf %0, %2 : vector<2x1024xf32>
    %c0_3 = arith.constant 0 : index
    %c0_4 = arith.constant 0 : index
    %4 = vector.load %arg3[%c0_3, %c0_4] : memref<2x1024xf32, #tpu.memory_space<vmem>>, vector<2x1024xf32>
    tpu.vector_store %arg3[%c0_3, %c0_4], %3 {strides = array<i32>} : memref<2x1024xf32, #tpu.memory_space<vmem>>, vector<2x1024xf32>,
    return
  }
  func.func @transform_0(%arg0: i32) -> (i32, i32) {
    %c0_i32 = arith.constant 0 : i32
    %c0_i32_0 = arith.constant 0 : i32
    return %arg0, %c0_i32 : i32, i32
  }
  func.func @transform_1(%arg0: i32) -> (i32, i32) {
    %c0_i32 = arith.constant 0 : i32
    %c0_i32_0 = arith.constant 0 : i32
    return %arg0, %c0_i32 : i32, i32
  }
  func.func @transform_2(%arg0: i32) -> (i32, i32) {
    %c0_i32 = arith.constant 0 : i32
    %c0_i32_0 = arith.constant 0 : i32
    return %arg0, %c0_i32 : i32, i32
  }
}

</mosaic_0001>

<bundles_post_ra>
// kernel: tpu_custom_call.1
= control target key start
LH: loop header
LB: loop body
LE: loop exit
PB: predicated region body
PF: predicated region fallthrough
CT: control target
= control target key end

     0   :  { %7 = vsyncpa [#allocation3], 0  ;;  %s135_s0 = inlined_call_operand.hbm [shape: f32[2,1024], index: 0, kind: input, shape index: {}]   ;;  %s136_s1 = inlined_call_operand.vmem [shape: f32[2,1], index: 1, kind: input, shape index: {}]   ;;  %s137_s2 = inlined_call_operand.hbm [shape: f32[2,1024], index: 2, kind: output, shape index: {}]  }
   0x1   :  { %8 = vsyncpa [#allocation4], 0  ;;  %s107_s9 = smov [#allocation2]  }
   0x2   :  { %s15_s10 = sshll.u32 %s107_s9, 4  ;;  %s16_s10 = int_to_ptr.vmem [resolvable:$true] %s15_s10 }
   0x3   :  { %s71_s11 = scalar_lea.vmem %s16_s10, 256  ;;  %p76_p1 = scmp.lt.s32.totalorder %s16_s10, %s16_s10 }
   0x4   :  { %p72_p0 = scmp.ne.s32.totalorder %s16_s10, %s71_s11  ;;  %p77_p2 = scmp.lt.s32.totalorder %s71_s11, %s71_s11 }
   0x6   :  { %p78_p3 = por %p77_p2, %p76_p1 }
   0x8   :  { %p79_p4 = pnand %p78_p3, %p72_p0 }
   0xa   :  { %82 = shalt.err (!%p79_p4)
}
   0xb   :  { %18 = dma.hbm_to_vmem [thread:$0]  %s135_s0, 256, %s16_s10, [#allocation3]  }
   0xc   :  { %103 = dma.done.wait [#allocation3], 256  }
   0xd   :  { %104 = vsyncadd [#allocation3], 4294967040  ;;  %v108_v0 = vmov 0   ;;  %v26_v1 = vld [vmem:[%s136_s1] sm:$0x3]  ;;  %v34_v4 = vlaneseq  ;;  %v25_v10 = vld [vmem:[#allocation2 + $0x8] sm:$0xff] }
   0xe   :  { %62 = vset.pattern.permute.xlu0 %v108_v0  ;;  %v109_v2 = vmov 269488144   ;;  %v24_v9 = vld [vmem:[#allocation2] sm:$0xff]  ;;  %s110_s16 = smov [#allocation5]  }
   0xf   :  { %29 = vperm.xlu0 %62, %v26_v1   ;;  %v32_v3 = vunpack.c.l.s4 %v109_v2  ;;  %v35_v6 = vshrl.u32 %v34_v4, 7  ;;  %s49_s0 = sshll.u32 %s110_s16, 4  ;;  %s50_s0 = int_to_ptr.vmem [resolvable:$true] %s49_s0 }
  0x10   :  { %s83_s17 = scalar_lea.vmem %s50_s0, 256  ;;  %p88_p6 = scmp.lt.s32.totalorder %s50_s0, %s50_s0 }
  0x11   :  { %v33_v5 = vunpack.c.0.s8 %v32_v3  ;;  %p84_p5 = scmp.ne.s32.totalorder %s50_s0, %s83_s17  ;;  %p89_p7 = scmp.lt.s32.totalorder %s83_s17, %s83_s17 }
  0x13   :  { %v36_v7 = vsub.s32 %v33_v5, %v35_v6  ;;  %p90_p8 = por %p89_p7, %p88_p6 }
  0x15   :  { %p91_p9 = pnand %p90_p8, %p84_p5 }
  0x8a   :  { %v30_v8 = vpop.permute.xlu0 %29 }
  0x8b   :  { %v37_v11 = vrot.slane %v30_v8, %v36_v7 }
  0x8d   :  { %v39_v12 = vmul.f32 %v37_v11, %v24_v9  ;;  %v40_v13 = vmul.f32 %v37_v11, %v25_v10 }
  0x8f   :  { %41 = vst [vmem:[#allocation5] sm:$0xff] %v39_v12  ;;  %42 = vst [vmem:[#allocation5 + $0x8] sm:$0xff] %v40_v13 }
  0x90   :  { %94 = shalt.err (!%p91_p9)
}
  0x91   :  { %52 = dma.vmem_to_hbm [thread:$0]  %s50_s0, 256, %s137_s2, [#allocation4]  }
  0x92   :  { %105 = dma.done.wait [#allocation4], 256  }
  0x93   :  { %106 = vsyncadd [#allocation4], 4294967040 }
  0x94   :  { %56 = vsyncpa [#allocation3], 1 }
  0x95   :  { %57 = vsyncpa [#allocation4], 1 }

</bundles_post_ra>
